<compile_context>
chip_gen: v6e
topology: v6e:2x2x1
jax: 0.10.0
libtpu: 0.0.40
codegen_flags: <defaults>
</compile_context>

<pallas_src>
import functools

import jax
import jax.numpy as jnp
from jax.experimental import pallas as pl
from jax.experimental.pallas import tpu as pltpu


def _round_up(v, m):
    return ((v + m - 1) // m) * m


def _dual_tensorcore_chip():
    """True on chips with 2 TensorCores sharing the 'parallel' grid axis (v7x)."""
    try:
        kind = jax.devices()[0].device_kind.lower()
    except Exception:
        return False
    return ("v7" in kind) or ("7x" in kind)


def _pick_batches_per_tile(B, G, Kp, Dp, in_bytes, out_bytes, *,
                           target_rows=1024, vmem_budget=32 << 20,
                           prefer_even_steps=False):
    """m = batch elements per grid step.  Largest m (dividing B) whose tile fits the row
    target and VMEM budget; on dual-TC chips (v7x) prefer an even number (>=2) of grid
    steps so both TensorCores get balanced work.  On single-TC chips (v5e/v6e) just take
    the largest fitting tile (per-step overhead ~0.35us dominates small tiles)."""
    def need(m):  # double-buffered streamed operands + single-buffered residents
        return (2 * m * G * Kp * in_bytes + 2 * m * G * Dp * out_bytes
                + Kp * Dp * in_bytes + G * Dp * 4)

    divisors = [m for m in range(1, B + 1) if B % m == 0]
    fitting = [m for m in divisors
               if m * G <= target_rows and need(m) <= vmem_budget] or [1]
    if prefer_even_steps:
        even = [m for m in fitting if (B // m) >= 2 and (B // m) % 2 == 0]
        if even:
            return max(even)
    return max(fitting)


def _embeddings_kernel(patch_ref, w_ref, pos_ref, out_ref):
    # patch_ref: (m, G, Kp)  bf16/f32 — G = n_patches+1; row 0 per batch elem is zeros.
    # w_ref    : (Kp, Dp)    conv weight, pre-transposed in the wrapper (resident).
    # pos_ref  : (G, Dp) f32 row 0 = cls_token+pos[0]; rows 1.. = pos[1:]+conv_bias.
    # out_ref  : (m, G, Dp)
    w = w_ref[...]
    pos = pos_ref[...]
    # Static unroll over the batch elements in this tile: each is a well-formed 2-D
    # (G, Kp) @ (Kp, Dp) MXU matmul with f32 accumulation; the op is memory-bound at ViT
    # shapes so per-group matmuls (G rows each) keep the MXU adequately fed while keeping
    # every block sublane/lane aligned (G equals the full array dim).
    for g in range(patch_ref.shape[0]):
        proj = jnp.dot(patch_ref[g], w, preferred_element_type=jnp.float32)  # (G, Dp)
        out_ref[g] = (proj + pos).astype(out_ref.dtype)


@functools.partial(jax.jit,
                   static_argnames=("patch_size", "mxu_dtype", "single_buffer_residents"))
def _embeddings_impl(x, conv_w, conv_b, cls_token, pos_emb, *,
                     patch_size, mxu_dtype, single_buffer_residents):
    B, C, H, W = x.shape
    D = conv_w.shape[0]
    ph, pw = patch_size
    assert H % ph == 0 and W % pw == 0, "image size must be divisible by patch size"
    N = (H // ph) * (W // pw)
    G = N + 1                        # n_patches + cls row per batch element
    K = C * ph * pw
    Kp = _round_up(K, 128)           # lane-dense MXU K feed (zero columns are exact)
    Dp = _round_up(D, 128)           # lane-dense output stores

    # --- wrapper glue (all static-shape, one-time) ---------------------------------
    # im2col, channel-major within a patch (matches OIHW weight flattening), plus an
    # all-zero row 0 per batch element (becomes the cls token) and zero-padded K.
    p = x.reshape(B, C, H // ph, ph, W // pw, pw)
    p = p.transpose(0, 2, 4, 1, 3, 5)                       # (B, Hp, Wp, C, ph, pw)
    p = p.reshape(B, N, K)
    patches = jnp.pad(p, ((0, 0), (1, 0), (0, Kp - K))).astype(mxu_dtype)   # (B, G, Kp)

    # Conv weight: OIHW -> (D, K) free reshape, one-time pad + transpose to (Kp, Dp).
    w_t = jnp.pad(conv_w.reshape(D, K),
                  ((0, Dp - D), (0, Kp - K))).T.astype(mxu_dtype)           # (Kp, Dp)

    # Position block (kept f32; added after the f32-accumulated matmul):
    #   row 0     = cls_token + pos[0]
    #   rows 1..N = pos[1:]   + conv_bias        (bias folded in)
    pos_full = pos_emb.reshape(G, D).astype(jnp.float32)
    pos_block = jnp.concatenate(
        [pos_full[:1] + cls_token.reshape(1, D).astype(jnp.float32),
         pos_full[1:] + conv_b.reshape(1, D).astype(jnp.float32)], axis=0)
    pos_block = jnp.pad(pos_block, ((0, 0), (0, Dp - D)))                   # (G, Dp)

    out_dtype = x.dtype
    in_bytes = jnp.dtype(mxu_dtype).itemsize
    out_bytes = jnp.dtype(out_dtype).itemsize

    m = _pick_batches_per_tile(B, G, Kp, Dp, in_bytes, out_bytes,
                               target_rows=1024,
                               prefer_even_steps=_dual_tensorcore_chip())
    steps = B // m

    # Explicit scoped-VMEM limit so big tiles work on v5e (16 MiB default) too.
    tile_bytes = (2 * m * G * Kp * in_bytes + 2 * m * G * Dp * out_bytes
                  + Kp * Dp * in_bytes + G * Dp * 4)
    vmem_limit = int(min(max(2 * tile_bytes + (4 << 20), 32 << 20), 48 << 20))

    resident_kwargs = (dict(pipeline_mode=pl.Buffered(1))
                       if single_buffer_residents else {})

    out3d = pl.pallas_call(
        _embeddings_kernel,
        out_shape=jax.ShapeDtypeStruct((B, G, Dp), out_dtype),
        grid_spec=pltpu.PrefetchScalarGridSpec(
            num_scalar_prefetch=0,
            grid=(steps,),
            in_specs=[
                pl.BlockSpec((m, G, Kp), lambda i: (i, 0, 0)),               # streamed
                pl.BlockSpec((Kp, Dp), lambda i: (0, 0), **resident_kwargs),  # weight
                pl.BlockSpec((G, Dp), lambda i: (0, 0), **resident_kwargs),   # pos+bias+cls
            ],
            out_specs=pl.BlockSpec((m, G, Dp), lambda i: (i, 0, 0)),
        ),
        compiler_params=pltpu.CompilerParams(
            dimension_semantics=("parallel",),
            vmem_limit_bytes=vmem_limit),
    )(patches, w_t, pos_block)

    if Dp != D:
        out3d = out3d[:, :, :D]      # only hits non-128-multiple d_model (toy configs)
    return out3d                     # (B, N+1, D)


def embeddings_forward(x, conv_w, conv_b, cls_token, pos_emb, *, patch_size,
                       mxu_dtype=jnp.bfloat16):
    """ViT Embeddings forward.  x: (B, C, H, W) NCHW; conv_w: (D, C, ph, pw) (OIHW).
    Returns (B, n_patches + 1, D)."""
    try:
        return _embeddings_impl(x, conv_w, conv_b, cls_token, pos_emb,
                                patch_size=patch_size, mxu_dtype=mxu_dtype,
                                single_buffer_residents=True)
    except Exception:
        # Fallback for jax versions without BlockSpec(pipeline_mode=pl.Buffered(1)).
        return _embeddings_impl(x, conv_w, conv_b, cls_token, pos_emb,
                                patch_size=patch_size, mxu_dtype=mxu_dtype,
                                single_buffer_residents=False)


def _reference(x, conv_w, conv_b, cls_token, pos_emb, patch_size):
    """Pure-JAX f32 reference mirroring the PyTorch forward."""
    B = x.shape[0]
    y = jax.lax.conv_general_dilated(
        x, conv_w, window_strides=patch_size, padding="VALID",
        dimension_numbers=("NCHW", "OIHW", "NCHW"))
    y = y + conv_b.reshape(1, -1, 1, 1)
    y = y.reshape(B, y.shape[1], -1)          # flatten(2)
    y = jnp.swapaxes(y, -1, -2)               # transpose(-1, -2)
    cls = jnp.broadcast_to(cls_token, (B,) + cls_token.shape[1:])
    y = jnp.concatenate([cls, y], axis=1)
    return y + pos_emb


if __name__ == "__main__":
    # Small config: img_size=16, patch_size=4, in_channels=3, d_model=32
    B, C, H, W = 2, 3, 16, 16
    ph = pw = 4
    D = 32
    N = (H // ph) * (W // pw)

    key = jax.random.PRNGKey(0)
    kx, kw, kb, kc, kp = jax.random.split(key, 5)
    x = jax.random.normal(kx, (B, C, H, W), dtype=jnp.float32)
    conv_w = jax.random.normal(kw, (D, C, ph, pw), dtype=jnp.float32) * 0.05
    conv_b = jax.random.normal(kb, (D,), dtype=jnp.float32) * 0.05
    # PyTorch inits these to zeros; use small random values to exercise the add path.
    cls_token = jax.random.normal(kc, (1, 1, D), dtype=jnp.float32) * 0.02
    pos_emb = jax.random.normal(kp, (1, N + 1, D), dtype=jnp.float32) * 0.02

    out = embeddings_forward(x, conv_w, conv_b, cls_token, pos_emb,
                             patch_size=(ph, pw))
    out = jax.block_until_ready(out)

    ref = _reference(x, conv_w, conv_b, cls_token, pos_emb, (ph, pw))
    assert out.shape == (B, N + 1, D), out.shape
    max_err = float(jnp.max(jnp.abs(out.astype(jnp.float32) - ref)))
    # bf16 MXU operands with f32 accumulation: small rounding vs the f32 reference.
    assert max_err < 3e-2, max_err
    print("KERNEL_OK")
</pallas_src>

<mosaic_0001>
module attributes {stable_mosaic.version = 11 : i64} {
  func.func @_embeddings_kernel(%arg0: i32, %arg1: memref<2x17x128xbf16, #tpu.memory_space<vmem>>, %arg2: memref<128x128xbf16, #tpu.memory_space<vmem>>, %arg3: memref<17x128xf32, #tpu.memory_space<vmem>>, %arg4: memref<2x17x128xf32, #tpu.memory_space<vmem>>) attributes {dimension_semantics = [#tpu.dimension_semantics<parallel>], iteration_bounds = array<i64: 1>, scalar_prefetch = 0 : i64, scratch_operands = 0 : i64, tpu.core_type = #tpu.core_type<tc>, window_params = [{transform_indices = @transform_0, window_bounds = array<i64: 2, 17, 128>}, {pipeline_mode = #tpu.pipeline_mode<synchronous>, transform_indices = @transform_1, window_bounds = array<i64: 128, 128>}, {pipeline_mode = #tpu.pipeline_mode<synchronous>, transform_indices = @transform_2, window_bounds = array<i64: 17, 128>}, {transform_indices = @transform_3, window_bounds = array<i64: 2, 17, 128>}]} {
    %c0 = arith.constant 0 : index
    %c0_0 = arith.constant 0 : index
    %0 = vector.load %arg2[%c0, %c0_0] : memref<128x128xbf16, #tpu.memory_space<vmem>>, vector<128x128xbf16>
    %c0_1 = arith.constant 0 : index
    %c0_2 = arith.constant 0 : index
    %1 = vector.load %arg3[%c0_1, %c0_2] : memref<17x128xf32, #tpu.memory_space<vmem>>, vector<17x128xf32>
    %c0_3 = arith.constant 0 : index
    %c0_4 = arith.constant 0 : index
    %c0_5 = arith.constant 0 : index
    %2 = vector.load %arg1[%c0_3, %c0_4, %c0_5] : memref<2x17x128xbf16, #tpu.memory_space<vmem>>, vector<1x17x128xbf16>
    %3 = vector.shape_cast %2 : vector<1x17x128xbf16> to vector<17x128xbf16>
    %cst = arith.constant dense<0.000000e+00> : vector<17x128xf32>
    %4 = tpu.matmul %3, %0, %cst {dimension_numbers = #tpu.dot_dimension_numbers<[1], [0], [0], [1], [0, 0, 1, 1], [], []>} : vector<17x128xbf16>, vector<128x128xbf16>, vector<17x128xf32> -> vector<17x128xf32>
    %5 = arith.addf %4, %1 : vector<17x128xf32>
    %c0_6 = arith.constant 0 : index
    %c0_7 = arith.constant 0 : index
    %c0_8 = arith.constant 0 : index
    %6 = vector.load %arg4[%c0_6, %c0_7, %c0_8] : memref<2x17x128xf32, #tpu.memory_space<vmem>>, vector<1x17x128xf32>
    %7 = vector.shape_cast %6 : vector<1x17x128xf32> to vector<17x128xf32>
    %8 = vector.shape_cast %5 : vector<17x128xf32> to vector<1x17x128xf32>
    tpu.vector_store %arg4[%c0_6, %c0_7, %c0_8], %8 {strides = array<i32>} : memref<2x17x128xf32, #tpu.memory_space<vmem>>, vector<1x17x128xf32>,
    %c1 = arith.constant 1 : index
    %c0_9 = arith.constant 0 : index
    %c0_10 = arith.constant 0 : index
    %9 = vector.load %arg1[%c1, %c0_9, %c0_10] : memref<2x17x128xbf16, #tpu.memory_space<vmem>>, vector<1x17x128xbf16>
    %10 = vector.shape_cast %9 : vector<1x17x128xbf16> to vector<17x128xbf16>
    %cst_11 = arith.constant dense<0.000000e+00> : vector<17x128xf32>
    %11 = tpu.matmul %10, %0, %cst_11 {dimension_numbers = #tpu.dot_dimension_numbers<[1], [0], [0], [1], [0, 0, 1, 1], [], []>} : vector<17x128xbf16>, vector<128x128xbf16>, vector<17x128xf32> -> vector<17x128xf32>
    %12 = arith.addf %11, %1 : vector<17x128xf32>
    %c1_12 = arith.constant 1 : index
    %c0_13 = arith.constant 0 : index
    %c0_14 = arith.constant 0 : index
    %13 = vector.load %arg4[%c1_12, %c0_13, %c0_14] : memref<2x17x128xf32, #tpu.memory_space<vmem>>, vector<1x17x128xf32>
    %14 = vector.shape_cast %13 : vector<1x17x128xf32> to vector<17x128xf32>
    %15 = vector.shape_cast %12 : vector<17x128xf32> to vector<1x17x128xf32>
    tpu.vector_store %arg4[%c1_12, %c0_13, %c0_14], %15 {strides = array<i32>} : memref<2x17x128xf32, #tpu.memory_space<vmem>>, vector<1x17x128xf32>,
    return
  }
  func.func @transform_0(%arg0: i32) -> (i32, i32, i32) {
    %c0_i32 = arith.constant 0 : i32
    %c0_i32_0 = arith.constant 0 : i32
    %c0_i32_1 = arith.constant 0 : i32
    return %arg0, %c0_i32, %c0_i32_0 : i32, i32, i32
  }
  func.func @transform_1(%arg0: i32) -> (i32, i32) {
    %c0_i32 = arith.constant 0 : i32
    %c0_i32_0 = arith.constant 0 : i32
    %c0_i32_1 = arith.constant 0 : i32
    return %c0_i32, %c0_i32_0 : i32, i32
  }
  func.func @transform_2(%arg0: i32) -> (i32, i32) {
    %c0_i32 = arith.constant 0 : i32
    %c0_i32_0 = arith.constant 0 : i32
    %c0_i32_1 = arith.constant 0 : i32
    return %c0_i32, %c0_i32_0 : i32, i32
  }
  func.func @transform_3(%arg0: i32) -> (i32, i32, i32) {
    %c0_i32 = arith.constant 0 : i32
    %c0_i32_0 = arith.constant 0 : i32
    %c0_i32_1 = arith.constant 0 : i32
    return %arg0, %c0_i32, %c0_i32_0 : i32, i32, i32
  }
}

module attributes {stable_mosaic.version = 11 : i64} {
  func.func @_embeddings_kernel(%arg0: i32, %arg1: memref<2x17x128xbf16, #tpu.memory_space<vmem>>, %arg2: memref<128x128xbf16, #tpu.memory_space<vmem>>, %arg3: memref<17x128xf32, #tpu.memory_space<vmem>>, %arg4: memref<2x17x128xf32, #tpu.memory_space<vmem>>) attributes {dimension_semantics = [#tpu.dimension_semantics<parallel>], iteration_bounds = array<i64: 1>, scalar_prefetch = 0 : i64, scratch_operands = 0 : i64, tpu.core_type = #tpu.core_type<tc>, window_params = [{transform_indices = @transform_0, window_bounds = array<i64: 2, 17, 128>}, {pipeline_mode = #tpu.pipeline_mode<synchronous>, transform_indices = @transform_1, window_bounds = array<i64: 128, 128>}, {pipeline_mode = #tpu.pipeline_mode<synchronous>, transform_indices = @transform_2, window_bounds = array<i64: 17, 128>}, {transform_indices = @transform_3, window_bounds = array<i64: 2, 17, 128>}]} {
    %c0 = arith.constant 0 : index
    %c0_0 = arith.constant 0 : index
    %0 = vector.load %arg2[%c0, %c0_0] : memref<128x128xbf16, #tpu.memory_space<vmem>>, vector<128x128xbf16>
    %c0_1 = arith.constant 0 : index
    %c0_2 = arith.constant 0 : index
    %1 = vector.load %arg3[%c0_1, %c0_2] : memref<17x128xf32, #tpu.memory_space<vmem>>, vector<17x128xf32>
    %c0_3 = arith.constant 0 : index
    %c0_4 = arith.constant 0 : index
    %c0_5 = arith.constant 0 : index
    %2 = vector.load %arg1[%c0_3, %c0_4, %c0_5] : memref<2x17x128xbf16, #tpu.memory_space<vmem>>, vector<1x17x128xbf16>
    %3 = vector.shape_cast %2 : vector<1x17x128xbf16> to vector<17x128xbf16>
    %cst = arith.constant dense<0.000000e+00> : vector<17x128xf32>
    %4 = tpu.matmul %3, %0, %cst {dimension_numbers = #tpu.dot_dimension_numbers<[1], [0], [0], [1], [0, 0, 1, 1], [], []>} : vector<17x128xbf16>, vector<128x128xbf16>, vector<17x128xf32> -> vector<17x128xf32>
    %5 = arith.addf %4, %1 : vector<17x128xf32>
    %c0_6 = arith.constant 0 : index
    %c0_7 = arith.constant 0 : index
    %c0_8 = arith.constant 0 : index
    %6 = vector.load %arg4[%c0_6, %c0_7, %c0_8] : memref<2x17x128xf32, #tpu.memory_space<vmem>>, vector<1x17x128xf32>
    %7 = vector.shape_cast %6 : vector<1x17x128xf32> to vector<17x128xf32>
    %8 = vector.shape_cast %5 : vector<17x128xf32> to vector<1x17x128xf32>
    tpu.vector_store %arg4[%c0_6, %c0_7, %c0_8], %8 {strides = array<i32>} : memref<2x17x128xf32, #tpu.memory_space<vmem>>, vector<1x17x128xf32>,
    %c1 = arith.constant 1 : index
    %c0_9 = arith.constant 0 : index
    %c0_10 = arith.constant 0 : index
    %9 = vector.load %arg1[%c1, %c0_9, %c0_10] : memref<2x17x128xbf16, #tpu.memory_space<vmem>>, vector<1x17x128xbf16>
    %10 = vector.shape_cast %9 : vector<1x17x128xbf16> to vector<17x128xbf16>
    %cst_11 = arith.constant dense<0.000000e+00> : vector<17x128xf32>
    %11 = tpu.matmul %10, %0, %cst_11 {dimension_numbers = #tpu.dot_dimension_numbers<[1], [0], [0], [1], [0, 0, 1, 1], [], []>} : vector<17x128xbf16>, vector<128x128xbf16>, vector<17x128xf32> -> vector<17x128xf32>
    %12 = arith.addf %11, %1 : vector<17x128xf32>
    %c1_12 = arith.constant 1 : index
    %c0_13 = arith.constant 0 : index
    %c0_14 = arith.constant 0 : index
    %13 = vector.load %arg4[%c1_12, %c0_13, %c0_14] : memref<2x17x128xf32, #tpu.memory_space<vmem>>, vector<1x17x128xf32>
    %14 = vector.shape_cast %13 : vector<1x17x128xf32> to vector<17x128xf32>
    %15 = vector.shape_cast %12 : vector<17x128xf32> to vector<1x17x128xf32>
    tpu.vector_store %arg4[%c1_12, %c0_13, %c0_14], %15 {strides = array<i32>} : memref<2x17x128xf32, #tpu.memory_space<vmem>>, vector<1x17x128xf32>,
    return
  }
  func.func @transform_0(%arg0: i32) -> (i32, i32, i32) {
    %c0_i32 = arith.constant 0 : i32
    %c0_i32_0 = arith.constant 0 : i32
    %c0_i32_1 = arith.constant 0 : i32
    return %arg0, %c0_i32, %c0_i32_0 : i32, i32, i32
  }
  func.func @transform_1(%arg0: i32) -> (i32, i32) {
    %c0_i32 = arith.constant 0 : i32
    %c0_i32_0 = arith.constant 0 : i32
    %c0_i32_1 = arith.constant 0 : i32
    return %c0_i32, %c0_i32_0 : i32, i32
  }
  func.func @transform_2(%arg0: i32) -> (i32, i32) {
    %c0_i32 = arith.constant 0 : i32
    %c0_i32_0 = arith.constant 0 : i32
    %c0_i32_1 = arith.constant 0 : i32
    return %c0_i32, %c0_i32_0 : i32, i32
  }
  func.func @transform_3(%arg0: i32) -> (i32, i32, i32) {
    %c0_i32 = arith.constant 0 : i32
    %c0_i32_0 = arith.constant 0 : i32
    %c0_i32_1 = arith.constant 0 : i32
    return %arg0, %c0_i32, %c0_i32_0 : i32, i32, i32
  }
}

</mosaic_0001>

<bundles_post_ra>
// kernel: _embeddings_impl.1
= control target key start
LH: loop header
LB: loop body
LE: loop exit
PB: predicated region body
PF: predicated region fallthrough
CT: control target
= control target key end

     0   :  { %s389_s1 = inlined_call_operand.vmem [shape: bf16[128,128], index: 1, kind: input, shape index: {}]   ;;  %s390_s0 = inlined_call_operand.vmem [shape: bf16[2,17,128], index: 0, kind: input, shape index: {}]   ;;  %s391_s2 = inlined_call_operand.vmem [shape: f32[17,128], index: 2, kind: input, shape index: {}]   ;;  %s392_s3 = inlined_call_operand.vmem [shape: f32[2,17,128], index: 3, kind: output, shape index: {}]  }
   0x1   :  { %v294_v0 = vld [vmem:[%s389_s1 + $0x38] sm:$0xff]   ;;  %v295_v1 = vld [vmem:[%s389_s1 + $0x30] sm:$0xff]   ;;  %v296_v2 = vld [vmem:[%s389_s1 + $0x28] sm:$0xff]  }
   0x2   :  { %254 = vmatprep.subr.bf16.mxu0 %v294_v0  ;;  %274 = vmatprep.subr.bf16.mxu1 %v294_v0  ;;  %v297_v3 = vld [vmem:[%s389_s1 + $0x20] sm:$0xff]   ;;  %v303_v5 = vld [vmem:[%s390_s0 + $0xc] sm:$0xff]   ;;  %v298_v6 = vld [vmem:[%s389_s1 + $0x18] sm:$0xff]  }
   0x3   :  { %255 = vmatpush3.bf16.msra.mxu0 %v294_v0  ;;  %275 = vmatpush3.bf16.msra.mxu1 %v294_v0  ;;  %v302_v4 = vld [vmem:[%s390_s0] sm:$0xff]   ;;  %v299_v7 = vld [vmem:[%s389_s1 + $0x10] sm:$0xff]   ;;  %v300_v8 = vld [vmem:[%s389_s1 + $0x8] sm:$0xff]  }
   0x4   :  { %256 = vmatprep.subr.bf16.mxu0 %v295_v1  ;;  %276 = vmatprep.subr.bf16.mxu1 %v295_v1  ;;  %v301_v9 = vld [vmem:[%s389_s1] sm:$0xff]   ;;  %v304_v10 = vld [vmem:[%s390_s0 + $0x8] ss:$0 sps:$4 sm:$0x11]   ;;  %v33_v12 = vld [vmem:[%s391_s2 + $0x10] sm:$0x1] }
   0x5   :  { %270 = vmatprep.mubr.bf16.mxu0 %v302_v4  ;;  %290 = vmatprep.mubr.bf16.mxu1 %v303_v5  ;;  %v305_v11 = vld [vmem:[%s390_s0 + $0x14] ss:$0 sps:$4 sm:$0x11]   ;;  %v31_v15 = vld [vmem:[%s391_s2] sm:$0xff]  ;;  %v32_v24 = vld [vmem:[%s391_s2 + $0x8] sm:$0xff] }
   0x7   :  { %257 = vmatpush3.bf16.msra.mxu0 %v295_v1  ;;  %277 = vmatpush3.bf16.msra.mxu1 %v295_v1 }
   0x8   :  { %258 = vmatprep.subr.bf16.mxu0 %v296_v2  ;;  %278 = vmatprep.subr.bf16.mxu1 %v296_v2 }
   0xb   :  { %259 = vmatpush3.bf16.msra.mxu0 %v296_v2  ;;  %279 = vmatpush3.bf16.msra.mxu1 %v296_v2 }
   0xc   :  { %260 = vmatprep.subr.bf16.mxu0 %v297_v3  ;;  %280 = vmatprep.subr.bf16.mxu1 %v297_v3 }
   0xf   :  { %261 = vmatpush3.bf16.msra.mxu0 %v297_v3  ;;  %281 = vmatpush3.bf16.msra.mxu1 %v297_v3 }
  0x10   :  { %262 = vmatprep.subr.bf16.mxu0 %v298_v6  ;;  %282 = vmatprep.subr.bf16.mxu1 %v298_v6 }
  0x13   :  { %263 = vmatpush3.bf16.msra.mxu0 %v298_v6  ;;  %283 = vmatpush3.bf16.msra.mxu1 %v298_v6 }
  0x14   :  { %264 = vmatprep.subr.bf16.mxu0 %v299_v7  ;;  %284 = vmatprep.subr.bf16.mxu1 %v299_v7 }
  0x17   :  { %265 = vmatpush3.bf16.msra.mxu0 %v299_v7  ;;  %285 = vmatpush3.bf16.msra.mxu1 %v299_v7 }
  0x18   :  { %266 = vmatprep.subr.bf16.mxu0 %v300_v8  ;;  %286 = vmatprep.subr.bf16.mxu1 %v300_v8 }
  0x1b   :  { %267 = vmatpush3.bf16.msra.mxu0 %v300_v8  ;;  %287 = vmatpush3.bf16.msra.mxu1 %v300_v8 }
  0x1c   :  { %268 = vmatprep.subr.bf16.mxu0 %v301_v9  ;;  %288 = vmatprep.subr.bf16.mxu1 %v301_v9 }
  0x1f   :  { %269 = vmatpush3.bf16.msra.mxu0 %v301_v9  ;;  %289 = vmatpush3.bf16.msra.mxu1 %v301_v9 }
  0x22   :  { %271 = vmatmul.mubr.bf16.vlgmr.msra.gmra.mxu0 %v304_v10  ;;  %291 = vmatmul.mubr.bf16.vlgmr.msra.gmra.mxu1 %v305_v11 }
  0xe2   :  { %v272_v13 = vpop.f32.mrf.mxu0  ;;  %v292_v14 = vpop.f32.mrf.mxu1 }
  0xe3   :  { %v138_v16 = vadd.f32 %v272_v13, %v33_v12  ;;  %v203_v17 = vadd.f32 %v292_v14, %v33_v12 }
  0xe4   :  { %v129_v18 = vpop.f32.mrf.mxu0  ;;  %v194_v19 = vpop.f32.mrf.mxu1 }
  0xe5   :  { %145 = vst [vmem:[%s392_s3 + $0x10] sm:$0x1] %v138_v16  ;;  %233 = vst [vmem:[%s392_s3 + $0x28] sm:$0x1] %v203_v17  ;;  %v130_v20 = vadd.f32 %v129_v18, %v31_v15  ;;  %v195_v21 = vadd.f32 %v194_v19, %v31_v15 }
  0xe6   :  { %v273_v22 = vpop.f32.mrf.mxu0  ;;  %v293_v23 = vpop.f32.mrf.mxu1 }
  0xe7   :  { %143 = vst [vmem:[%s392_s3] sm:$0xff] %v130_v20  ;;  %231 = vst [vmem:[%s392_s3 + $0x18] sm:$0xff] %v195_v21 }
  0xe8   :  { %v132_v25 = vpop.f32.mrf.mxu0  ;;  %v197_v26 = vpop.f32.mrf.mxu1 }
  0xe9   :  { %v133_v27 = vadd.f32 %v132_v25, %v32_v24  ;;  %v198_v28 = vadd.f32 %v197_v26, %v32_v24 }
  0xeb   :  { %144 = vst [vmem:[%s392_s3 + $0x8] sm:$0xff] %v133_v27  ;;  %232 = vst [vmem:[%s392_s3 + $0x20] sm:$0xff] %v198_v28 }

// kernel: _embeddings_impl.1
= control target key start
LH: loop header
LB: loop body
LE: loop exit
PB: predicated region body
PF: predicated region fallthrough
CT: control target
= control target key end

     0   :  { %s389_s1 = inlined_call_operand.vmem [shape: bf16[128,128], index: 1, kind: input, shape index: {}]   ;;  %s390_s0 = inlined_call_operand.vmem [shape: bf16[2,17,128], index: 0, kind: input, shape index: {}]   ;;  %s391_s2 = inlined_call_operand.vmem [shape: f32[17,128], index: 2, kind: input, shape index: {}]   ;;  %s392_s3 = inlined_call_operand.vmem [shape: f32[2,17,128], index: 3, kind: output, shape index: {}]  }
   0x1   :  { %v294_v0 = vld [vmem:[%s389_s1 + $0x38] sm:$0xff]   ;;  %v295_v1 = vld [vmem:[%s389_s1 + $0x30] sm:$0xff]   ;;  %v296_v2 = vld [vmem:[%s389_s1 + $0x28] sm:$0xff]  }
   0x2   :  { %254 = vmatprep.subr.bf16.mxu0 %v294_v0  ;;  %274 = vmatprep.subr.bf16.mxu1 %v294_v0  ;;  %v297_v3 = vld [vmem:[%s389_s1 + $0x20] sm:$0xff]   ;;  %v303_v5 = vld [vmem:[%s390_s0 + $0xc] sm:$0xff]   ;;  %v298_v6 = vld [vmem:[%s389_s1 + $0x18] sm:$0xff]  }
   0x3   :  { %255 = vmatpush3.bf16.msra.mxu0 %v294_v0  ;;  %275 = vmatpush3.bf16.msra.mxu1 %v294_v0  ;;  %v302_v4 = vld [vmem:[%s390_s0] sm:$0xff]   ;;  %v299_v7 = vld [vmem:[%s389_s1 + $0x10] sm:$0xff]   ;;  %v300_v8 = vld [vmem:[%s389_s1 + $0x8] sm:$0xff]  }
   0x4   :  { %256 = vmatprep.subr.bf16.mxu0 %v295_v1  ;;  %276 = vmatprep.subr.bf16.mxu1 %v295_v1  ;;  %v301_v9 = vld [vmem:[%s389_s1] sm:$0xff]   ;;  %v304_v10 = vld [vmem:[%s390_s0 + $0x8] ss:$0 sps:$4 sm:$0x11]   ;;  %v33_v12 = vld [vmem:[%s391_s2 + $0x10] sm:$0x1] }
   0x5   :  { %270 = vmatprep.mubr.bf16.mxu0 %v302_v4  ;;  %290 = vmatprep.mubr.bf16.mxu1 %v303_v5  ;;  %v305_v11 = vld [vmem:[%s390_s0 + $0x14] ss:$0 sps:$4 sm:$0x11]   ;;  %v31_v15 = vld [vmem:[%s391_s2] sm:$0xff]  ;;  %v32_v24 = vld [vmem:[%s391_s2 + $0x8] sm:$0xff] }
   0x7   :  { %257 = vmatpush3.bf16.msra.mxu0 %v295_v1  ;;  %277 = vmatpush3.bf16.msra.mxu1 %v295_v1 }
   0x8   :  { %258 = vmatprep.subr.bf16.mxu0 %v296_v2  ;;  %278 = vmatprep.subr.bf16.mxu1 %v296_v2 }
   0xb   :  { %259 = vmatpush3.bf16.msra.mxu0 %v296_v2  ;;  %279 = vmatpush3.bf16.msra.mxu1 %v296_v2 }
   0xc   :  { %260 = vmatprep.subr.bf16.mxu0 %v297_v3  ;;  %280 = vmatprep.subr.bf16.mxu1 %v297_v3 }
   0xf   :  { %261 = vmatpush3.bf16.msra.mxu0 %v297_v3  ;;  %281 = vmatpush3.bf16.msra.mxu1 %v297_v3 }
  0x10   :  { %262 = vmatprep.subr.bf16.mxu0 %v298_v6  ;;  %282 = vmatprep.subr.bf16.mxu1 %v298_v6 }
  0x13   :  { %263 = vmatpush3.bf16.msra.mxu0 %v298_v6  ;;  %283 = vmatpush3.bf16.msra.mxu1 %v298_v6 }
  0x14   :  { %264 = vmatprep.subr.bf16.mxu0 %v299_v7  ;;  %284 = vmatprep.subr.bf16.mxu1 %v299_v7 }
  0x17   :  { %265 = vmatpush3.bf16.msra.mxu0 %v299_v7  ;;  %285 = vmatpush3.bf16.msra.mxu1 %v299_v7 }
  0x18   :  { %266 = vmatprep.subr.bf16.mxu0 %v300_v8  ;;  %286 = vmatprep.subr.bf16.mxu1 %v300_v8 }
  0x1b   :  { %267 = vmatpush3.bf16.msra.mxu0 %v300_v8  ;;  %287 = vmatpush3.bf16.msra.mxu1 %v300_v8 }
  0x1c   :  { %268 = vmatprep.subr.bf16.mxu0 %v301_v9  ;;  %288 = vmatprep.subr.bf16.mxu1 %v301_v9 }
  0x1f   :  { %269 = vmatpush3.bf16.msra.mxu0 %v301_v9  ;;  %289 = vmatpush3.bf16.msra.mxu1 %v301_v9 }
  0x22   :  { %271 = vmatmul.mubr.bf16.vlgmr.msra.gmra.mxu0 %v304_v10  ;;  %291 = vmatmul.mubr.bf16.vlgmr.msra.gmra.mxu1 %v305_v11 }
  0xe2   :  { %v272_v13 = vpop.f32.mrf.mxu0  ;;  %v292_v14 = vpop.f32.mrf.mxu1 }
  0xe3   :  { %v138_v16 = vadd.f32 %v272_v13, %v33_v12  ;;  %v203_v17 = vadd.f32 %v292_v14, %v33_v12 }
  0xe4   :  { %v129_v18 = vpop.f32.mrf.mxu0  ;;  %v194_v19 = vpop.f32.mrf.mxu1 }
  0xe5   :  { %145 = vst [vmem:[%s392_s3 + $0x10] sm:$0x1] %v138_v16  ;;  %233 = vst [vmem:[%s392_s3 + $0x28] sm:$0x1] %v203_v17  ;;  %v130_v20 = vadd.f32 %v129_v18, %v31_v15  ;;  %v195_v21 = vadd.f32 %v194_v19, %v31_v15 }
  0xe6   :  { %v273_v22 = vpop.f32.mrf.mxu0  ;;  %v293_v23 = vpop.f32.mrf.mxu1 }
  0xe7   :  { %143 = vst [vmem:[%s392_s3] sm:$0xff] %v130_v20  ;;  %231 = vst [vmem:[%s392_s3 + $0x18] sm:$0xff] %v195_v21 }
  0xe8   :  { %v132_v25 = vpop.f32.mrf.mxu0  ;;  %v197_v26 = vpop.f32.mrf.mxu1 }
  0xe9   :  { %v133_v27 = vadd.f32 %v132_v25, %v32_v24  ;;  %v198_v28 = vadd.f32 %v197_v26, %v32_v24 }
  0xeb   :  { %144 = vst [vmem:[%s392_s3 + $0x8] sm:$0xff] %v133_v27  ;;  %232 = vst [vmem:[%s392_s3 + $0x20] sm:$0xff] %v198_v28 }

</bundles_post_ra>
